<compile_context>
chip_gen: v7x
topology: tpu7x:2x2x1
jax: 0.10.0
libtpu: 0.0.40
codegen_flags: <defaults>
</compile_context>

<pallas_src>
import functools

import jax
import jax.numpy as jnp
from jax.experimental import pallas as pl
from jax.experimental.pallas import tpu as pltpu

_EPS = 1e-8
_LANES = 128
_TR_MAX = 2048  # rows per block -> 2048*128*4 B = 1 MiB f32 per block


def _adv_loss_kernel(x_ref, o_ref, *, ground_truth: bool):
    i = pl.program_id(0)

    @pl.when(i == 0)
    def _():
        o_ref[...] = jnp.zeros_like(o_ref)

    x = x_ref[...].astype(jnp.float32)
    if ground_truth:
        vals = jnp.log(x + _EPS)
    else:
        vals = jnp.log(1.0 - x + _EPS)

    # Pure-VPU partial reduction: (TR, 128) -> (TR//8, 8, 128) -> (8, 128)
    # (vreg-wise adds only; no XLU in the hot loop).
    tr = x_ref.shape[0]
    o_ref[...] += vals.reshape(tr // 8, 8, _LANES).sum(axis=0)


def adversarial_loss(disc_output: jax.Array, ground_truth: bool = True) -> jax.Array:
    shape = disc_output.shape
    if len(shape) != 4:
        raise IndexError(
            "This tensor has more than 3 dimensions, so is incorrectly sectioned"
        )
    N, C, H, W = shape
    total = N * C * H * W

    # ---- lane-dense (M, 128) slab with neutral padding -------------------
    m_raw = pl.cdiv(total, _LANES)           # rows needed
    m8 = ((m_raw + 7) // 8) * 8              # round rows up to sublane multiple
    tr = min(_TR_MAX, m8)                    # rows per grid step (multiple of 8)
    m = pl.cdiv(m_raw, tr) * tr              # padded row count (multiple of tr)
    padded_total = m * _LANES

    x_flat = disc_output.reshape(-1)
    pad = padded_total - total
    if pad:
        # Pad value whose log-term is exactly 0.0 in f32, so the padded
        # elements contribute nothing to the sum (mean stays exact).
        pad_val = jnp.asarray(1.0 if ground_truth else 0.0, dtype=x_flat.dtype)
        x_flat = jnp.concatenate([x_flat, jnp.full((pad,), pad_val, x_flat.dtype)])
    x2d = x_flat.reshape(m, _LANES)

    grid = (m // tr,)
    kernel = functools.partial(_adv_loss_kernel, ground_truth=ground_truth)

    partials = pl.pallas_call(
        kernel,
        out_shape=jax.ShapeDtypeStruct((8, _LANES), jnp.float32),
        grid_spec=pl.GridSpec(
            grid=grid,
            in_specs=[pl.BlockSpec((tr, _LANES), lambda i: (i, 0))],
            out_specs=pl.BlockSpec((8, _LANES), lambda i: (0, 0)),
        ),
        compiler_params=pltpu.CompilerParams(
            dimension_semantics=("arbitrary",),
        ),
    )(x2d)

    # Single cross-lane/sublane reduce + scale outside the hot loop.
    return -jnp.sum(partials) / jnp.float32(total)


def _reference(disc_output, ground_truth: bool):
    x = disc_output.astype(jnp.float32)
    if ground_truth:
        return -jnp.mean(jnp.log(x + _EPS))
    return -jnp.mean(jnp.log(1.0 - x + _EPS))


if __name__ == "__main__":
    key = jax.random.PRNGKey(0)
    # small "discriminator output" map in (0, 1): batch=2, channels=4, spatial=16x16
    x = jax.random.uniform(
        key, (2, 4, 16, 16), dtype=jnp.float32, minval=0.01, maxval=0.99
    )

    ok = True
    for gt in (True, False):
        got = jax.block_until_ready(adversarial_loss(x, ground_truth=gt))
        want = _reference(x, gt)
        if not jnp.allclose(got, want, rtol=1e-5, atol=1e-5):
            ok = False
            print(f"MISMATCH (ground_truth={gt}): got={got}, want={want}")

    if ok:
        print("KERNEL_OK")
</pallas_src>

<mosaic_0001>
module attributes {stable_mosaic.version = 11 : i64} {
  func.func @_adv_loss_kernel(%arg0: i32, %arg1: memref<16x128xf32, #tpu.memory_space<vmem>>, %arg2: memref<8x128xf32, #tpu.memory_space<vmem>>) attributes {dimension_semantics = [#tpu.dimension_semantics<arbitrary>], iteration_bounds = array<i64: 1>, scalar_prefetch = 0 : i64, scratch_operands = 0 : i64, tpu.core_type = #tpu.core_type<tc>, window_params = [{transform_indices = @transform_0, window_bounds = array<i64: 16, 128>}, {pipeline_mode = #tpu.pipeline_mode<synchronous>, transform_indices = @transform_1, window_bounds = array<i64: 8, 128>}]} {
    %c0_i32 = arith.constant 0 : i32
    %0 = arith.cmpi eq, %arg0, %c0_i32 : i32
    %1 = arith.extui %0 : i1 to i32
    %c0_i32_0 = arith.constant 0 : i32
    %2 = arith.cmpi ne, %1, %c0_i32_0 : i32
    scf.if %2 {
      %cst_7 = arith.constant 0.000000e+00 : f32
      %12 = vector.broadcast %cst_7 : f32 to vector<8x128xf32>
      %c0_8 = arith.constant 0 : index
      %c0_9 = arith.constant 0 : index
      %13 = vector.load %arg2[%c0_8, %c0_9] : memref<8x128xf32, #tpu.memory_space<vmem>>, vector<8x128xf32>
      tpu.vector_store %arg2[%c0_8, %c0_9], %12 {strides = array<i32>} : memref<8x128xf32, #tpu.memory_space<vmem>>, vector<8x128xf32>,
    } else {
    }
    %c0 = arith.constant 0 : index
    %c0_1 = arith.constant 0 : index
    %3 = vector.load %arg1[%c0, %c0_1] : memref<16x128xf32, #tpu.memory_space<vmem>>, vector<16x128xf32>
    %cst = arith.constant 9.99999993E-9 : f32
    %4 = vector.broadcast %cst : f32 to vector<16x128xf32>
    %5 = arith.addf %3, %4 : vector<16x128xf32>
    %6 = math.log %5 : vector<16x128xf32>
    %c0_2 = arith.constant 0 : index
    %c0_3 = arith.constant 0 : index
    %7 = vector.load %arg2[%c0_2, %c0_3] : memref<8x128xf32, #tpu.memory_space<vmem>>, vector<8x128xf32>
    %8 = vector.shape_cast %6 : vector<16x128xf32> to vector<2x8x128xf32>
    %cst_4 = arith.constant dense<0.000000e+00> : vector<8x128xf32>
    %9 = vector.multi_reduction <add>, %8, %cst_4 [0] : vector<2x8x128xf32> to vector<8x128xf32>
    %10 = arith.addf %7, %9 : vector<8x128xf32>
    %c0_5 = arith.constant 0 : index
    %c0_6 = arith.constant 0 : index
    %11 = vector.load %arg2[%c0_5, %c0_6] : memref<8x128xf32, #tpu.memory_space<vmem>>, vector<8x128xf32>
    tpu.vector_store %arg2[%c0_5, %c0_6], %10 {strides = array<i32>} : memref<8x128xf32, #tpu.memory_space<vmem>>, vector<8x128xf32>,
    return
  }
  func.func @transform_0(%arg0: i32) -> (i32, i32) {
    %c0_i32 = arith.constant 0 : i32
    %c0_i32_0 = arith.constant 0 : i32
    return %arg0, %c0_i32 : i32, i32
  }
  func.func @transform_1(%arg0: i32) -> (i32, i32) {
    %c0_i32 = arith.constant 0 : i32
    %c0_i32_0 = arith.constant 0 : i32
    %c0_i32_1 = arith.constant 0 : i32
    return %c0_i32, %c0_i32_0 : i32, i32
  }
}

</mosaic_0001>

<bundles_post_ra>
// kernel: tpu_custom_call.1
= control target key start
LH: loop header
LB: loop body
LE: loop exit
PB: predicated region body
PF: predicated region fallthrough
CT: control target
= control target key end

     0   :  { %6 = vsyncpa [#allocation3], 0  ;;  %s150_s0 = inlined_call_operand.hbm [shape: f32[16,128], index: 0, kind: input, shape index: {}]   ;;  %s151_s1 = inlined_call_operand.hbm [shape: f32[8,128], index: 1, kind: output, shape index: {}]  }
   0x1   :  { %7 = vsyncpa [#allocation4], 0  ;;  %s112_s6 = smov [#allocation2]   ;;  %s64_s10 = scalar_lea.hbm %s150_s0, 256 }
   0x2   :  { %s13_s7 = sshll.u32 %s112_s6, 4  ;;  %p65_p0 = scmp.ne.s32.totalorder %s150_s0, %s64_s10  ;;  %s14_s7 = int_to_ptr.vmem [resolvable:$true] %s13_s7 }
   0x3   :  { %p68_p1 = scmp.lt.u32.totalorder %s64_s10, %s150_s0 }
   0x5   :  { %p70_p2 = pnand %p68_p1, %p65_p0 }
   0x7   :  { %73 = shalt.err (!%p70_p2)
}
   0x8   :  { %s74_s15 = scalar_lea.vmem %s14_s7, 256  ;;  %p79_p4 = scmp.lt.s32.totalorder %s14_s7, %s14_s7 }
   0x9   :  { %p75_p3 = scmp.ne.s32.totalorder %s14_s7, %s74_s15  ;;  %p80_p5 = scmp.lt.s32.totalorder %s74_s15, %s74_s15 }
   0xb   :  { %p81_p6 = por %p80_p5, %p79_p4 }
   0xd   :  { %p82_p7 = pnand %p81_p6, %p75_p3 }
   0xf   :  { %85 = shalt.err (!%p82_p7)
}
  0x10   :  { %s113_s16 = smov 128   ;;  %s114_s17 = smov 8  }
  0x11   :  { %19 = dma.hbm_to_vmem [thread:$0]  %s150_s0, 256, %s14_s7, [#allocation3], %s113_s16, %s113_s16, %s114_s17  }
  0x12   :  { %108 = dma.done.wait [#allocation3], 256  }
  0x13   :  { %109 = vsyncadd [#allocation3], 4294967040  ;;  %v28_v0 = vld [vmem:[#allocation2] sm:$0xff]  ;;  %v29_v1 = vld [vmem:[#allocation2 + $0x8] sm:$0xff]  ;;  %s115_s20 = smov [#allocation5]  }
  0x14   :  { %v30_v2 = vadd.f32 1e-08, %v28_v0  ;;  %v31_v3 = vadd.f32 1e-08, %v29_v1  ;;  %s46_s21 = sshll.u32 %s115_s20, 4  ;;  %s47_s21 = int_to_ptr.vmem [resolvable:$true] %s46_s21 }
  0x15   :  { %s86_s22 = scalar_lea.vmem %s47_s21, 128  ;;  %p91_p9 = scmp.lt.s32.totalorder %s47_s21, %s47_s21 }
  0x16   :  { %60 = vlog2.f32 %v30_v2  ;;  %p87_p8 = scmp.ne.s32.totalorder %s47_s21, %s86_s22  ;;  %p92_p10 = scmp.lt.s32.totalorder %s86_s22, %s86_s22 }
  0x17   :  { %62 = vlog2.f32 %v31_v3 }
  0x18   :  { %p93_p11 = por %p92_p10, %p91_p9 }
  0x1a   :  { %p94_p12 = pnand %p93_p11, %p87_p8 }
  0x20   :  { %v61_v4 = vpop.eup %60 }
  0x21   :  { %v63_v5 = vpop.eup %62  ;;  %v33_v6 = vmul.f32 0.6931472, %v61_v4 }
  0x22   :  { %v35_v7 = vmul.f32 0.6931472, %v63_v5 }
  0x24   :  { %v37_v8 = vadd.f32 %v35_v7, %v33_v6 }
  0x26   :  { %39 = vst [vmem:[#allocation5] sm:$0xff] %v37_v8 }
  0x27   :  { %97 = shalt.err (!%p94_p12)
}
  0x28   :  { %s98_s24 = scalar_lea.hbm %s151_s1, 128 }
  0x29   :  { %p99_p13 = scmp.ne.s32.totalorder %s151_s1, %s98_s24  ;;  %p102_p0 = scmp.lt.u32.totalorder %s98_s24, %s151_s1 }
  0x2b   :  { %p104_p1 = pnand %p102_p0, %p99_p13 }
  0x2d   :  { %107 = shalt.err (!%p104_p1)
}
  0x2e   :  { %49 = dma.vmem_to_hbm [thread:$0]  %s47_s21, 128, %s151_s1, [#allocation4]  }
  0x2f   :  { %110 = dma.done.wait [#allocation4], 128  }
  0x30   :  { %111 = vsyncadd [#allocation4], 4294967168 }
  0x31   :  { %53 = vsyncpa [#allocation3], 1 }
  0x32   :  { %54 = vsyncpa [#allocation4], 1 }

</bundles_post_ra>
